<compile_context>
chip_gen: v7x
topology: tpu7x:2x2x1
jax: 0.10.0
libtpu: 0.0.40
codegen_flags: <defaults>
</compile_context>

<pallas_src>
import functools

import jax
import jax.numpy as jnp
from jax.experimental import pallas as pl
from jax.experimental.pallas import tpu as pltpu

_LANE = 128
_SUBLANE = 8
# Raw elements per grid block (~2 MiB as f32). Double-buffered native-dtype
# input + in-kernel f32 temporaries stay well under the 32 MiB scoped-VMEM
# limit requested below (v7x physical VMEM is 64 MiB).
_DEFAULT_BLOCK_ELEMS = 512 * 1024


def _planes_per_block(num_planes, plane_elems, block_elems, sublane_align):
    """Pick how many (H, W) planes each grid step processes."""
    if num_planes * plane_elems <= block_elems:
        return num_planes
    tp = max(1, block_elems // plane_elems)
    if sublane_align:
        # Planes live on the second-minor (sublane) axis of the block; keep it
        # a multiple of 8 (or the full dim) so the (8, 128) tiling is clean.
        tp = (tp // _SUBLANE) * _SUBLANE if tp >= _SUBLANE else _SUBLANE
    return max(1, min(tp, num_planes))


def _tv_kernel_flat(x_ref, wmask_ref, h_ref, w_ref, *, H, W):
    """W < 128 path: each plane is one lane-dense row of length H*W."""
    P = H * W
    xv = x_ref[...].astype(jnp.float32)               # (tp, H*W) f32 in VMEM

    if H > 1:
        # +W neighbour in flattened order == next image row; the first
        # (H-1)*W columns are exactly the valid (h, h+1) pairs -- no mask.
        dh = xv[:, W:] - xv[:, :P - W]
        h_part = jnp.sum(dh * dh)
    else:
        h_part = jnp.float32(0.0)

    if W > 1:
        # +1 neighbour in flattened order; pairs crossing an image-row
        # boundary (w == W-1) are zeroed by the precomputed mask.
        # TODO(synk): a pltpu.roll-based shift would keep this off the
        # load/store slots; kept as slices for robustness (HBM-bound anyway).
        dw = xv[:, 1:] - xv[:, :P - 1]
        w_part = jnp.sum(dw * dw * wmask_ref[:, :P - 1])
    else:
        w_part = jnp.float32(0.0)

    h_ref[...] = h_part + jnp.zeros(h_ref.shape, jnp.float32)
    w_ref[...] = w_part + jnp.zeros(w_ref.shape, jnp.float32)


def _tv_kernel_3d(x_ref, h_ref, w_ref, *, H, W):
    """W >= 128 path: (tp, H, W) tiles, straight forward differences."""
    xv = x_ref[...].astype(jnp.float32)                # (tp, H, W)

    if H > 1:
        dh = xv[:, 1:, :] - xv[:, :H - 1, :]
        h_part = jnp.sum(dh * dh)
    else:
        h_part = jnp.float32(0.0)

    if W > 1:
        dw = xv[:, :, 1:] - xv[:, :, :W - 1]
        w_part = jnp.sum(dw * dw)
    else:
        w_part = jnp.float32(0.0)

    h_ref[...] = h_part + jnp.zeros(h_ref.shape, jnp.float32)
    w_ref[...] = w_part + jnp.zeros(w_ref.shape, jnp.float32)


def tv_loss(x, tv_loss_weight: float = 1.0, *,
            block_elems: int = _DEFAULT_BLOCK_ELEMS):
    """Total-variation loss matching the PyTorch TVLoss.forward semantics."""
    B, C, H, W = x.shape
    weight = float(tv_loss_weight)
    count_h = float(C * (H - 1) * W)      # tensor_size(x[:, :, 1:, :])
    count_w = float(C * H * (W - 1))      # tensor_size(x[:, :, :, 1:])

    BC = B * C
    plane = H * W

    if W < _LANE:
        # Lane-dense path: flatten each plane to a single row of H*W lanes.
        tp = _planes_per_block(BC, plane, block_elems, sublane_align=True)
        num_blocks = -(-BC // tp)
        bc_pad = num_blocks * tp

        xr = x.reshape(BC, plane)
        if bc_pad != BC:
            # Zero planes contribute exactly 0 to both sums.
            xr = jnp.pad(xr, ((0, bc_pad - BC), (0, 0)))

        # Mask for the +1 diffs: 1.0 where the pair stays inside an image row.
        cols = jnp.arange(plane, dtype=jnp.int32)
        wmask = jnp.where((cols % W) != (W - 1), 1.0, 0.0)
        wmask = wmask.astype(jnp.float32).reshape(1, plane)

        kernel = functools.partial(_tv_kernel_flat, H=H, W=W)
        in_specs = [
            pl.BlockSpec((tp, plane), lambda i: (i, 0)),
            pl.BlockSpec((1, plane), lambda i: (0, 0)),
        ]
        args = (xr, wmask)
    else:
        # W already spans >= one full lane register: keep (tp, H, W) tiles.
        tp = _planes_per_block(BC, plane, block_elems, sublane_align=False)
        num_blocks = -(-BC // tp)
        bc_pad = num_blocks * tp

        xr = x.reshape(BC, H, W)
        if bc_pad != BC:
            xr = jnp.pad(xr, ((0, bc_pad - BC), (0, 0), (0, 0)))

        kernel = functools.partial(_tv_kernel_3d, H=H, W=W)
        in_specs = [pl.BlockSpec((tp, H, W), lambda i: (i, 0, 0))]
        args = (xr,)

    part_shape = jax.ShapeDtypeStruct((num_blocks, _SUBLANE, _LANE),
                                      jnp.float32)
    out_specs = (
        pl.BlockSpec((1, _SUBLANE, _LANE), lambda i: (i, 0, 0)),
        pl.BlockSpec((1, _SUBLANE, _LANE), lambda i: (i, 0, 0)),
    )

    in_bytes = bc_pad * plane * xr.dtype.itemsize
    out_bytes = 2 * num_blocks * _SUBLANE * _LANE * 4
    cost = pl.CostEstimate(flops=4 * bc_pad * plane, transcendentals=0,
                           bytes_accessed=in_bytes + out_bytes)

    h_parts, w_parts = pl.pallas_call(
        kernel,
        out_shape=(part_shape, part_shape),
        grid=(num_blocks,),
        in_specs=in_specs,
        out_specs=out_specs,
        compiler_params=pltpu.CompilerParams(
            dimension_semantics=("parallel",),
            vmem_limit_bytes=32 * 1024 * 1024,
        ),
        cost_estimate=cost,
    )(*args)

    # Tiny final reduce + normalization in JAX (num_blocks scalars each).
    h_tv = jnp.sum(h_parts[:, 0, 0])
    w_tv = jnp.sum(w_parts[:, 0, 0])
    return weight * 2.0 * (h_tv / count_h + w_tv / count_w) / float(B)


def tv_loss_ref(x, tv_loss_weight: float = 1.0):
    """Pure-JAX reference mirroring the PyTorch forward exactly."""
    B, C, H, W = x.shape
    xf = x.astype(jnp.float32)
    count_h = C * (H - 1) * W
    count_w = C * H * (W - 1)
    h_tv = jnp.sum((xf[:, :, 1:, :] - xf[:, :, :H - 1, :]) ** 2)
    w_tv = jnp.sum((xf[:, :, :, 1:] - xf[:, :, :, :W - 1]) ** 2)
    return tv_loss_weight * 2.0 * (h_tv / count_h + w_tv / count_w) / B


if __name__ == "__main__":
    # Primary shape (NCHW input implied by the module).
    x = jax.random.normal(jax.random.PRNGKey(0), (2, 4, 16, 16),
                          dtype=jnp.float32)
    out = jax.block_until_ready(tv_loss(x, tv_loss_weight=1.0))
    ref = tv_loss_ref(x, 1.0)
    assert jnp.allclose(out, ref, rtol=1e-5, atol=1e-5), (out, ref)

    # bf16 input, multi-block grid + zero-plane padding (W < 128 path).
    xb = jax.random.normal(jax.random.PRNGKey(1), (3, 5, 16, 16),
                           dtype=jnp.bfloat16)
    out_b = jax.block_until_ready(tv_loss(xb, 0.5, block_elems=2 * 16 * 16))
    ref_b = tv_loss_ref(xb, 0.5)
    assert jnp.allclose(out_b, ref_b, rtol=1e-3, atol=1e-3), (out_b, ref_b)

    # Lane-dense W >= 128 path, one plane per grid step.
    xw = jax.random.normal(jax.random.PRNGKey(2), (2, 3, 8, 128),
                           dtype=jnp.float32)
    out_w = jax.block_until_ready(tv_loss(xw, 1.0, block_elems=1024))
    ref_w = tv_loss_ref(xw, 1.0)
    assert jnp.allclose(out_w, ref_w, rtol=1e-5, atol=1e-5), (out_w, ref_w)

    print("KERNEL_OK")
</pallas_src>

<mosaic_0001>
module attributes {stable_mosaic.version = 11 : i64} {
  func.func @_tv_kernel_flat(%arg0: i32, %arg1: memref<8x256xf32, #tpu.memory_space<vmem>>, %arg2: memref<1x256xf32, #tpu.memory_space<vmem>>, %arg3: memref<1x8x128xf32, #tpu.memory_space<vmem>>, %arg4: memref<1x8x128xf32, #tpu.memory_space<vmem>>) attributes {dimension_semantics = [#tpu.dimension_semantics<parallel>], iteration_bounds = array<i64: 1>, scalar_prefetch = 0 : i64, scratch_operands = 0 : i64, tpu.core_type = #tpu.core_type<tc>, window_params = [{transform_indices = @transform_0, window_bounds = array<i64: 8, 256>}, {pipeline_mode = #tpu.pipeline_mode<synchronous>, transform_indices = @transform_1, window_bounds = array<i64: 1, 256>}, {transform_indices = @transform_2, window_bounds = array<i64: 1, 8, 128>}, {transform_indices = @transform_3, window_bounds = array<i64: 1, 8, 128>}]} {
    %c0 = arith.constant 0 : index
    %c0_0 = arith.constant 0 : index
    %0 = vector.load %arg1[%c0, %c0_0] : memref<8x256xf32, #tpu.memory_space<vmem>>, vector<8x256xf32>
    %1 = vector.extract_strided_slice %0 {offsets = [0, 16], sizes = [8, 240], strides = [1, 1]} : vector<8x256xf32> to vector<8x240xf32>
    %2 = vector.extract_strided_slice %0 {offsets = [0, 0], sizes = [8, 240], strides = [1, 1]} : vector<8x256xf32> to vector<8x240xf32>
    %3 = arith.subf %1, %2 : vector<8x240xf32>
    %4 = arith.mulf %3, %3 : vector<8x240xf32>
    %5 = vector.shape_cast %4 : vector<8x240xf32> to vector<1x8x240xf32>
    %cst = arith.constant dense<0.000000e+00> : vector<1xf32>
    %6 = vector.multi_reduction <add>, %5, %cst [1, 2] : vector<1x8x240xf32> to vector<1xf32>
    %7 = vector.shape_cast %6 : vector<1xf32> to vector<1x1x1xf32>
    %8 = vector.extract %7[0, 0, 0] : f32 from vector<1x1x1xf32>
    %9 = vector.extract_strided_slice %0 {offsets = [0, 1], sizes = [8, 255], strides = [1, 1]} : vector<8x256xf32> to vector<8x255xf32>
    %10 = vector.extract_strided_slice %0 {offsets = [0, 0], sizes = [8, 255], strides = [1, 1]} : vector<8x256xf32> to vector<8x255xf32>
    %11 = arith.subf %9, %10 : vector<8x255xf32>
    %12 = arith.mulf %11, %11 : vector<8x255xf32>
    %c0_1 = arith.constant 0 : index
    %c0_2 = arith.constant 0 : index
    %13 = vector.load %arg2[%c0_1, %c0_2] : memref<1x256xf32, #tpu.memory_space<vmem>>, vector<1x255xf32>
    %14 = vector.broadcast %13 : vector<1x255xf32> to vector<8x255xf32>
    %15 = arith.mulf %12, %14 : vector<8x255xf32>
    %16 = vector.shape_cast %15 : vector<8x255xf32> to vector<1x8x255xf32>
    %cst_3 = arith.constant dense<0.000000e+00> : vector<1xf32>
    %17 = vector.multi_reduction <add>, %16, %cst_3 [1, 2] : vector<1x8x255xf32> to vector<1xf32>
    %18 = vector.shape_cast %17 : vector<1xf32> to vector<1x1x1xf32>
    %19 = vector.extract %18[0, 0, 0] : f32 from vector<1x1x1xf32>
    %cst_4 = arith.constant 0.000000e+00 : f32
    %20 = vector.broadcast %cst_4 : f32 to vector<1x8x128xf32>
    %21 = vector.broadcast %8 : f32 to vector<1x8x128xf32>
    %22 = arith.addf %21, %20 : vector<1x8x128xf32>
    %c0_5 = arith.constant 0 : index
    %c0_6 = arith.constant 0 : index
    %c0_7 = arith.constant 0 : index
    %23 = vector.load %arg3[%c0_5, %c0_6, %c0_7] : memref<1x8x128xf32, #tpu.memory_space<vmem>>, vector<1x8x128xf32>
    tpu.vector_store %arg3[%c0_5, %c0_6, %c0_7], %22 {strides = array<i32>} : memref<1x8x128xf32, #tpu.memory_space<vmem>>, vector<1x8x128xf32>,
    %cst_8 = arith.constant 0.000000e+00 : f32
    %24 = vector.broadcast %cst_8 : f32 to vector<1x8x128xf32>
    %25 = vector.broadcast %19 : f32 to vector<1x8x128xf32>
    %26 = arith.addf %25, %24 : vector<1x8x128xf32>
    %c0_9 = arith.constant 0 : index
    %c0_10 = arith.constant 0 : index
    %c0_11 = arith.constant 0 : index
    %27 = vector.load %arg4[%c0_9, %c0_10, %c0_11] : memref<1x8x128xf32, #tpu.memory_space<vmem>>, vector<1x8x128xf32>
    tpu.vector_store %arg4[%c0_9, %c0_10, %c0_11], %26 {strides = array<i32>} : memref<1x8x128xf32, #tpu.memory_space<vmem>>, vector<1x8x128xf32>,
    return
  }
  func.func @transform_0(%arg0: i32) -> (i32, i32) {
    %c0_i32 = arith.constant 0 : i32
    %c0_i32_0 = arith.constant 0 : i32
    return %arg0, %c0_i32 : i32, i32
  }
  func.func @transform_1(%arg0: i32) -> (i32, i32) {
    %c0_i32 = arith.constant 0 : i32
    %c0_i32_0 = arith.constant 0 : i32
    %c0_i32_1 = arith.constant 0 : i32
    return %c0_i32, %c0_i32_0 : i32, i32
  }
  func.func @transform_2(%arg0: i32) -> (i32, i32, i32) {
    %c0_i32 = arith.constant 0 : i32
    %c0_i32_0 = arith.constant 0 : i32
    %c0_i32_1 = arith.constant 0 : i32
    return %arg0, %c0_i32, %c0_i32_0 : i32, i32, i32
  }
  func.func @transform_3(%arg0: i32) -> (i32, i32, i32) {
    %c0_i32 = arith.constant 0 : i32
    %c0_i32_0 = arith.constant 0 : i32
    %c0_i32_1 = arith.constant 0 : i32
    return %arg0, %c0_i32, %c0_i32_0 : i32, i32, i32
  }
}

</mosaic_0001>

<bundles_post_ra>
// kernel: tpu_custom_call.1
= control target key start
LH: loop header
LB: loop body
LE: loop exit
PB: predicated region body
PF: predicated region fallthrough
CT: control target
= control target key end

     0   :  { %9 = vsyncpa [#allocation3], 0  ;;  %s302_s0 = inlined_call_operand.hbm [shape: f32[8,256], index: 0, kind: input, shape index: {}]   ;;  %s303_s1 = inlined_call_operand.vmem [shape: f32[1,256], index: 1, kind: input, shape index: {}]   ;;  %s304_s2 = inlined_call_operand.hbm [shape: f32[1,8,128], index: 2, kind: output, shape index: {0}]   ;;  %s305_s3 = inlined_call_operand.hbm [shape: f32[1,8,128], index: 3, kind: output, shape index: {1}]  }
   0x1   :  { %10 = vsyncpa [#allocation4], 0 }
   0x2   :  { %11 = vsyncpa [#allocation7], 0  ;;  %s234_s12 = smov [#allocation2]   ;;  %s162_s16 = scalar_lea.hbm %s302_s0, 256 }
   0x3   :  { %s18_s13 = sshll.u32 %s234_s12, 4  ;;  %p163_p0 = scmp.ne.s32.totalorder %s302_s0, %s162_s16  ;;  %s19_s13 = int_to_ptr.vmem [resolvable:$true] %s18_s13 }
   0x4   :  { %p166_p1 = scmp.lt.u32.totalorder %s162_s16, %s302_s0 }
   0x6   :  { %p168_p2 = pnand %p166_p1, %p163_p0 }
   0x8   :  { %171 = shalt.err (!%p168_p2)
}
   0x9   :  { %s172_s21 = scalar_lea.vmem %s19_s13, 256  ;;  %p177_p4 = scmp.lt.s32.totalorder %s19_s13, %s19_s13 }
   0xa   :  { %p173_p3 = scmp.ne.s32.totalorder %s19_s13, %s172_s21  ;;  %p178_p5 = scmp.lt.s32.totalorder %s172_s21, %s172_s21 }
   0xc   :  { %p179_p6 = por %p178_p5, %p177_p4 }
   0xe   :  { %p180_p7 = pnand %p179_p6, %p173_p3 }
  0x10   :  { %183 = shalt.err (!%p180_p7)
}
  0x11   :  { %21 = dma.hbm_to_vmem [thread:$0]  %s302_s0, 256, %s19_s13, [#allocation3]  }
  0x12   :  { %228 = dma.done.wait [#allocation3], 256  }
  0x13   :  { %229 = vsyncadd [#allocation3], 4294967040  ;;  %v78_v0 = vlaneseq  ;;  %v27_v2 = vld [vmem:[#allocation2] sm:$0xff]  ;;  %s235_s24 = smov 16   ;;  %s236_s25 = smov 1   ;;  %v28_v5 = vld [vmem:[#allocation2 + $0x8] sm:$0xff] }
  0x14   :  { %31 = vrot.lane.b32.xlu1 %v27_v2, %s235_s24  ;;  %64 = vrot.lane.b32.xlu0 %v27_v2, %s236_s25  ;;  %v76_v6 = vld [vmem:[%s303_s1] sm:$0x3]  ;;  %vm35_vm0 = vcmask 130048   ;;  %vm68_vm1 = vcmask 7168   ;;  %s237_s0 = smov 112   ;;  %s238_s1 = smov 127  }
  0x15   :  { %v79_v1 = vshrl.u32 %v78_v0, 7  ;;  %vm49_vm2 = vcmask 916480   ;;  %vm101_vm3 = vcmask 1039360   ;;  %s239_s28 = smov [#allocation5]   ;;  %s240_s4 = smov [#allocation6]  }
  0x16   :  { %s128_s29 = sshll.u32 %s239_s28, 4  ;;  %s138_s5 = sshll.u32 %s240_s4, 4  ;;  %s129_s29 = int_to_ptr.vmem [resolvable:$true] %s128_s29  ;;  %s139_s5 = int_to_ptr.vmem [resolvable:$true] %s138_s5 }
  0x17   :  { %v84_v3 = vsub.s32 1, %v79_v1  ;;  %v80_v4 = vsub.s32 0, %v79_v1  ;;  %s184_s6 = scalar_lea.vmem %s129_s29, 128  ;;  %p189_p9 = scmp.lt.s32.totalorder %s129_s29, %s129_s29 }
  0x18   :  { %33 = vrot.lane.b32.xlu1 %v28_v5, %s235_s24  ;;  %66 = vrot.lane.b32.xlu0 %v28_v5, %s236_s25  ;;  %p185_p8 = scmp.ne.s32.totalorder %s129_s29, %s184_s6  ;;  %p190_p10 = scmp.lt.s32.totalorder %s184_s6, %s184_s6 }
  0x19   :  { %v85_v7 = vrot.slane %v76_v6, %v84_v3  ;;  %v81_v8 = vrot.slane %v76_v6, %v80_v4 }
  0x1a   :  { %p191_p11 = por %p190_p10, %p189_p9 }
  0x1c   :  { %88 = vrot.lane.b32.xlu1 %v85_v7, %s236_s25  ;;  %86 = vrot.lane.b32.xlu0 %v81_v8, %s236_s25  ;;  %p192_p12 = pnand %p191_p11, %p185_p8 }
  0x86   :  { %v32_v9 = vpop.permute.xlu1 %31  ;;  %v65_v10 = vpop.permute.xlu0 %64 }
  0x87   :  { %v39_v11 = vsub.f32 %v27_v2, %v32_v9  ;;  %v72_v13 = vsub.f32 %v27_v2, %v65_v10 }
  0x89   :  { %v41_v12 = vmul.f32 %v39_v11, %v39_v11  ;;  %v74_v20 = vmul.f32 %v72_v13, %v72_v13 }
  0x8a   :  { %v34_v14 = vpop.permute.xlu1 %33  ;;  %v67_v15 = vpop.permute.xlu0 %66 }
  0x8b   :  { %v36_v16 = vsel %vm35_vm0, %v32_v9, %v34_v14  ;;  %v69_v17 = vsel %vm68_vm1, %v65_v10, %v67_v15  ;;  %45 = vrot.lane.b32.xlu0 %v41_v12, %s237_s0 }
  0x8c   :  { %v40_v18 = vsub.f32 %v28_v5, %v36_v16  ;;  %v73_v19 = vsub.f32 %v28_v5, %v69_v17 }
  0x8e   :  { %v42_v21 = vmul.f32 %v40_v18, %v40_v18  ;;  %v75_v22 = vmul.f32 %v73_v19, %v73_v19  ;;  %v89_v23 = vpop.permute.xlu1 %88  ;;  %v87_v24 = vpop.permute.xlu0 %86 }
  0x8f   :  { %v90_v25 = vsel %vm68_vm1, %v87_v24, %v89_v23  ;;  %v93_v26 = vmul.f32 %v87_v24, %v74_v20 }
  0x90   :  { %47 = vrot.lane.b32.xlu1 %v42_v21, %s237_s0  ;;  %v94_v27 = vmul.f32 %v90_v25, %v75_v22 }
  0x91   :  { %97 = vrot.lane.b32.xlu0 %v93_v26, %s238_s1 }
  0x94   :  { %99 = vrot.lane.b32.xlu1 %v94_v27, %s238_s1 }
  0xfd   :  { %v46_v28 = vpop.permute.xlu0 %45 }
 0x102   :  { %v48_v29 = vpop.permute.xlu1 %47 }
 0x103   :  { %v50_v30 = vsel %vm49_vm2, %v46_v28, %v48_v29  ;;  %v53_v31 = vsel %vm49_vm2, %v48_v29, 0.0  ;;  %v98_v33 = vpop.permute.xlu0 %97 }
 0x104   :  { %v54_v32 = vadd.f32 %v53_v31, %v50_v30 }
 0x106   :  { %v100_v34 = vpop.permute.xlu1 %99  ;;  %55 = vadd.xlane.f32.xlu0 %v54_v32 }
 0x107   :  { %v102_v35 = vsel %vm101_vm3, %v98_v33, %v100_v34  ;;  %v105_v36 = vsel %vm101_vm3, %v100_v34, 0.0 }
 0x108   :  { %v106_v37 = vadd.f32 %v105_v36, %v102_v35 }
 0x10a   :  { %107 = vadd.xlane.f32.xlu1 %v106_v37 }
 0x193   :  { %v56_v38 = vpop.xlane.xlu0 %55 }
 0x194   :  { %v57_v39 = vrot.slane %v56_v38, 4 }
 0x196   :  { %v58_v40 = vadd.f32 %v57_v39, %v56_v38 }
 0x197   :  { %v108_v41 = vpop.xlane.xlu1 %107 }
 0x198   :  { %v59_v42 = vrot.slane %v58_v40, 2  ;;  %v109_v43 = vrot.slane %v108_v41, 4 }
 0x19a   :  { %v110_v44 = vadd.f32 %v109_v43, %v108_v41  ;;  %v60_v45 = vadd.f32 %v59_v42, %v58_v40 }
 0x19c   :  { %v111_v46 = vrot.slane %v110_v44, 2  ;;  %v61_v47 = vrot.slane %v60_v45, 1 }
 0x19e   :  { %v112_v48 = vadd.f32 %v111_v46, %v110_v44  ;;  %v62_v49 = vadd.f32 %v61_v47, %v60_v45 }
 0x1a0   :  { %151 = vpush %v62_v49  ;;  %v113_v50 = vrot.slane %v112_v48, 1 }
 0x1a2   :  { %v114_v51 = vadd.f32 %v113_v50, %v112_v48 }
 0x1a4   :  { %153 = vpush %v114_v51 }
 0x1d1   :  { %s152_s30 = spop %151 }
 0x1d2   :  { %v116_v52 = vstv %s152_s30 }
 0x1d3   :  { %118 = vst [vmem:[#allocation5] sm:$0xff] %v116_v52 }
 0x1d4   :  { %195 = shalt.err (!%p192_p12)
}
 0x1d5   :  { %s196_s9 = scalar_lea.hbm %s304_s2, 128 }
 0x1d6   :  { %p197_p13 = scmp.ne.s32.totalorder %s304_s2, %s196_s9  ;;  %p200_p0 = scmp.lt.u32.totalorder %s196_s9, %s304_s2 }
 0x1d8   :  { %p202_p1 = pnand %p200_p0, %p197_p13 }
 0x1da   :  { %205 = shalt.err (!%p202_p1)
}
 0x1db   :  { %131 = dma.vmem_to_hbm [thread:$0]  %s129_s29, 128, %s304_s2, [#allocation4]  }
 0x1dc   :  { %s154_s16 = spop %153  ;;  %s206_s17 = scalar_lea.vmem %s139_s5, 128 }
 0x1dd   :  { %v119_v53 = vstv %s154_s16  ;;  %p207_p2 = scmp.ne.s32.totalorder %s139_s5, %s206_s17  ;;  %p211_p3 = scmp.lt.s32.totalorder %s139_s5, %s139_s5 }
 0x1de   :  { %121 = vst [vmem:[#allocation6] sm:$0xff] %v119_v53  ;;  %p212_p4 = scmp.lt.s32.totalorder %s206_s17, %s206_s17 }
 0x1e0   :  { %p213_p5 = por %p212_p4, %p211_p3 }
 0x1e2   :  { %p214_p6 = pnand %p213_p5, %p207_p2 }
 0x1e4   :  { %217 = shalt.err (!%p214_p6)
}
 0x1e5   :  { %s218_s20 = scalar_lea.hbm %s305_s3, 128 }
 0x1e6   :  { %p219_p7 = scmp.ne.s32.totalorder %s305_s3, %s218_s20  ;;  %p222_p8 = scmp.lt.u32.totalorder %s218_s20, %s305_s3 }
 0x1e8   :  { %p224_p9 = pnand %p222_p8, %p219_p7 }
 0x1ea   :  { %227 = shalt.err (!%p224_p9)
}
 0x1eb   :  { %141 = dma.vmem_to_hbm [thread:$0]  %s139_s5, 128, %s305_s3, [#allocation7]  }
 0x1ec   :  { %230 = dma.done.wait [#allocation4], 128  }
 0x1ed   :  { %231 = vsyncadd [#allocation4], 4294967168 }
 0x1ee   :  { %232 = dma.done.wait [#allocation7], 128  }
 0x1ef   :  { %233 = vsyncadd [#allocation7], 4294967168 }
 0x1f0   :  { %148 = vsyncpa [#allocation3], 1 }
 0x1f1   :  { %149 = vsyncpa [#allocation4], 1 }
 0x1f2   :  { %150 = vsyncpa [#allocation7], 1 }

</bundles_post_ra>
